<compile_context>
chip_gen: v7x
topology: tpu7x:2x2x1
jax: 0.10.0
libtpu: 0.0.40
codegen_flags: <defaults>
</compile_context>

<pallas_src>
import numpy as np
import jax
import jax.numpy as jnp
from jax.experimental import pallas as pl
from jax.experimental.pallas import tpu as pltpu


# ----------------------------- tiling helpers ------------------------------

def _largest_divisor(n, pred):
    for d in range(n, 0, -1):
        if n % d == 0 and pred(d):
            return d
    return None


def _smallest_divisor(n, pred):
    for d in range(1, n + 1):
        if n % d == 0 and pred(d):
            return d
    return None


def _vmem_capacity_bytes():
    try:
        return int(pltpu.get_tpu_info().vmem_capacity_bytes)
    except Exception:
        return 64 << 20          # conservative fallback: v7x per-TensorCore VMEM


def _choose_fold(cg, h, w, sublane_mult):
    """When cg alone under-fills the sublane tile (8/16/32 rows depending on
    dtype), fold h1 image rows into the sublane axis: x is viewed as
    (n, group, cg*h1, (h//h1)*w).  The per-column coefficients (zero weight on
    any tap that would cross a row boundary) broadcast unchanged, so no halo
    is needed."""
    if cg >= sublane_mult or h == 1:
        return 1
    target = -(-sublane_mult // cg)                  # ceil(sublane_mult / cg)
    divs = [d for d in range(1, h + 1) if h % d == 0]
    cands = [d for d in divs if d >= target] or [divs[-1]]
    for d in cands:                                  # prefer a lane-dense leftover
        if ((h // d) * w) % 128 == 0:
            return d
    return cands[0]


def _pick_tiles(rows_total, h2, w, itemsize, sublane_mult, ch_cap_bytes):
    """Pick (rows_tile, h2_tile).  Blocks are always legal (last two dims a
    multiple of (8,128) or equal to the full dims) and bounded by the byte
    cap; the fallbacks never silently return a VMEM-blowing full dimension."""
    sp_cap_elems = 32768                             # soft cap on lane elems / block

    # Lane axis: prefer lane-dense (multiple of 128) tiles under the soft cap.
    h2_tile = _largest_divisor(
        h2, lambda d: (d * w) % 128 == 0 and d * w <= sp_cap_elems)
    if h2_tile is None and h2 * w * itemsize <= 2 * ch_cap_bytes:
        # No aligned divisor: take the full lane axis (legal), amortizing the
        # masked store tail over many full vregs.
        h2_tile = h2
    if h2_tile is None:
        h2_tile = _smallest_divisor(h2, lambda d: (d * w) % 128 == 0)
    if h2_tile is None:
        h2_tile = h2                                 # last resort (legal)
    tile_lane = h2_tile * w

    # Row (sublane) axis: dtype-sized sublane multiples under the byte cap.
    def fits(d):
        return d * tile_lane * itemsize <= ch_cap_bytes

    rows_tile = _largest_divisor(
        rows_total, lambda d: fits(d) and (d % sublane_mult == 0 or d == rows_total))
    if rows_tile is None:
        rows_tile = _largest_divisor(
            rows_total, lambda d: fits(d) and (d % 8 == 0 or d == rows_total))
    if rows_tile is None:
        rows_tile = _smallest_divisor(rows_total, lambda d: d % 8 == 0)
    if rows_tile is None:
        rows_tile = rows_total                       # no %8 divisor exists at all
    return rows_tile, h2_tile


def _reflect_coeff_basis(k, w):
    """basis[kk, s, col] = 1 iff tap kk at column col, after reflection padding,
    reads the in-row element at shift (s - k//2) relative to col."""
    pad = k // 2
    basis = np.zeros((k, k, w), dtype=np.float32)
    for kk in range(k):
        for col in range(w):
            j = col + kk - pad
            if j < 0:
                j = -j
            elif j >= w:
                j = 2 * (w - 1) - j
            s_idx = j - col + pad                    # always in [0, k-1] when W > pad
            basis[kk, s_idx, col] = 1.0
    return basis


# ------------------------------- main kernel -------------------------------

def spatial_strip_att_pallas(x, conv_weight, *, kernel=5, group=2):
    """x: (N, C, H, W); conv_weight: (group*kernel, C, 1, 1).  H=True variant."""
    n, c, h, w = x.shape
    k = kernel
    pad = k // 2
    assert c % group == 0, "C must be divisible by group"
    assert w > pad, "W must exceed kernel//2 for reflection padding"
    cg = c // group
    itemsize = jnp.dtype(x.dtype).itemsize
    sublane_mult = max(8, 32 // itemsize)            # 8 f32 / 16 bf16 / 32 int8

    vmem_cap = _vmem_capacity_bytes()
    # Per-x-block byte cap: ~6.4 MiB on 128 MiB parts (v5e/v6e), ~3.2 MiB on
    # v7x's 64 MiB.  The kernel is HBM-bound, so big lane-dense blocks win.
    ch_cap_bytes = int(min(8 << 20, max(1 << 20, vmem_cap // 20)))

    h1 = _choose_fold(cg, h, w, sublane_mult)
    h2 = h // h1
    rows_total = cg * h1
    lane_total = h2 * w

    rows_tile, h2_tile = _pick_tiles(rows_total, h2, w, itemsize, sublane_mult,
                                     ch_cap_bytes)
    tile_lane = h2_tile * w

    # ---- tiny preamble (plain JAX): pool -> 1x1 conv -> sigmoid -> per-column
    #      tap coefficients that already encode the reflection boundaries ----
    mean = jnp.mean(x.astype(jnp.float32), axis=(2, 3))               # (N, C)
    w2 = conv_weight.reshape(group * k, c).astype(jnp.float32)        # (g*k, C)
    filt = jax.nn.sigmoid(mean @ w2.T).reshape(n, group, k)           # (N, g, k)
    basis = jnp.asarray(_reflect_coeff_basis(k, w))                   # (k, k, W)
    coef = jnp.einsum("ngk,ksw->ngsw", filt, basis)                   # (N, g, k, W)
    coef = coef.astype(x.dtype)                                       # keep VALU packed for bf16
    coef = jnp.broadcast_to(coef[:, :, :, None, :], (n, group, k, h2_tile, w))
    coef = coef.reshape(n, group, k, tile_lane)                       # (N, g, k, tile_lane)

    x4 = x.reshape(n, group, rows_total, lane_total)                  # free reshape

    def strip_kernel(x_ref, coef_ref, o_ref):
        xt = x_ref[0, 0]                                              # (rows_tile, tile_lane)
        ct = coef_ref[0, 0]                                           # (k, tile_lane)
        acc = xt * ct[pad:pad + 1, :]                                 # center tap, no roll
        for s_idx in range(k):
            if s_idx == pad:
                continue
            # shifted[p] = xt[p + (s_idx - pad)] (circular; wrapped positions
            # always carry a zero coefficient, so no cross-row contamination).
            shift = (pad - s_idx) % tile_lane
            shifted = pltpu.roll(xt, shift=shift, axis=1)
            acc = acc + shifted * ct[s_idx:s_idx + 1, :]
        o_ref[0, 0] = acc.astype(o_ref.dtype)

    # VMEM budget: double-buffered x + double-buffered out + double-buffered
    # coef + kernel temporaries (acc + one rolled block).
    x_blk = rows_tile * tile_lane * itemsize
    coef_blk = k * tile_lane * itemsize
    vmem_need = 2 * x_blk + 2 * x_blk + 2 * coef_blk + 2 * x_blk
    vmem_limit = int(min(0.72 * vmem_cap, max(1.5 * vmem_need, 32 << 20)))
    vmem_limit = int(max(vmem_limit, min(1.2 * vmem_need, 0.95 * vmem_cap)))

    grid = (n, group, rows_total // rows_tile, lane_total // tile_lane)

    out4 = pl.pallas_call(
        strip_kernel,
        out_shape=jax.ShapeDtypeStruct((n, group, rows_total, lane_total), x.dtype),
        grid=grid,
        in_specs=[
            pl.BlockSpec((1, 1, rows_tile, tile_lane),
                         lambda b, g, ci, si: (b, g, ci, si)),
            pl.BlockSpec((1, 1, k, tile_lane),
                         lambda b, g, ci, si: (b, g, 0, 0)),
        ],
        out_specs=pl.BlockSpec((1, 1, rows_tile, tile_lane),
                               lambda b, g, ci, si: (b, g, ci, si)),
        compiler_params=pltpu.CompilerParams(
            dimension_semantics=("parallel", "parallel", "parallel", "parallel"),
            vmem_limit_bytes=vmem_limit),
    )(x4, coef)

    return out4.reshape(n, c, h, w)


# ------------------------------ pure-JAX ref --------------------------------

def spatial_strip_att_ref(x, conv_weight, *, kernel=5, group=2):
    """Pure-JAX reference matching the PyTorch forward (H=True)."""
    n, c, h, w = x.shape
    k = kernel
    pad = k // 2
    mean = jnp.mean(x, axis=(2, 3))                                   # (N, C)
    logits = mean @ conv_weight.reshape(group * k, c).T               # (N, g*k)
    filt = jax.nn.sigmoid(logits).reshape(n, group, 1, k, 1)          # (N, g, 1, k, 1)
    xp = jnp.pad(x, ((0, 0), (0, 0), (0, 0), (pad, pad)), mode="reflect")
    cols = jnp.stack([xp[:, :, :, kk:kk + w] for kk in range(k)], axis=2)  # (N,C,k,H,W)
    cols = cols.reshape(n, group, c // group, k, h * w)
    out = jnp.sum(cols * filt, axis=3).reshape(n, c, h, w)
    return out


if __name__ == "__main__":
    key = jax.random.PRNGKey(0)
    kx, kw = jax.random.split(key)

    N, C, H, W = 2, 4, 16, 16
    KERNEL, GROUP = 5, 2

    x = jax.random.normal(kx, (N, C, H, W), dtype=jnp.float32)
    # Conv2d(dim, group*kernel, kernel_size=1, bias=False) weight: (group*k, C, 1, 1)
    conv_weight = (jax.random.normal(kw, (GROUP * KERNEL, C, 1, 1), dtype=jnp.float32)
                   * (1.0 / jnp.sqrt(C)))

    out = spatial_strip_att_pallas(x, conv_weight, kernel=KERNEL, group=GROUP)
    out = jax.block_until_ready(out)

    ref = spatial_strip_att_ref(x, conv_weight, kernel=KERNEL, group=GROUP)
    assert out.shape == (N, C, H, W)
    assert jnp.allclose(out, ref, atol=1e-5, rtol=1e-5), "mismatch vs reference"

    print("KERNEL_OK")
</pallas_src>

<mosaic_0001>
module attributes {stable_mosaic.version = 11 : i64} {
  func.func @strip_kernel(%arg0: i32, %arg1: i32, %arg2: i32, %arg3: i32, %arg4: memref<1x1x8x64xf32, #tpu.memory_space<vmem>>, %arg5: memref<1x1x5x64xf32, #tpu.memory_space<vmem>>, %arg6: memref<1x1x8x64xf32, #tpu.memory_space<vmem>>) attributes {dimension_semantics = [#tpu.dimension_semantics<parallel>, #tpu.dimension_semantics<parallel>, #tpu.dimension_semantics<parallel>, #tpu.dimension_semantics<parallel>], iteration_bounds = array<i64: 2, 2, 1, 1>, scalar_prefetch = 0 : i64, scratch_operands = 0 : i64, tpu.core_type = #tpu.core_type<tc>, window_params = [{transform_indices = @transform_0, window_bounds = array<i64: 1, 1, 8, 64>}, {transform_indices = @transform_1, window_bounds = array<i64: 1, 1, 5, 64>}, {transform_indices = @transform_2, window_bounds = array<i64: 1, 1, 8, 64>}]} {
    %c0 = arith.constant 0 : index
    %c0_0 = arith.constant 0 : index
    %c0_1 = arith.constant 0 : index
    %c0_2 = arith.constant 0 : index
    %0 = vector.load %arg4[%c0, %c0_0, %c0_1, %c0_2] : memref<1x1x8x64xf32, #tpu.memory_space<vmem>>, vector<1x1x8x64xf32>
    %1 = vector.shape_cast %0 : vector<1x1x8x64xf32> to vector<8x64xf32>
    %c0_3 = arith.constant 0 : index
    %c0_4 = arith.constant 0 : index
    %c0_5 = arith.constant 0 : index
    %c0_6 = arith.constant 0 : index
    %2 = vector.load %arg5[%c0_3, %c0_4, %c0_5, %c0_6] : memref<1x1x5x64xf32, #tpu.memory_space<vmem>>, vector<1x1x5x64xf32>
    %3 = vector.shape_cast %2 : vector<1x1x5x64xf32> to vector<5x64xf32>
    %4 = vector.extract_strided_slice %3 {offsets = [2, 0], sizes = [1, 64], strides = [1, 1]} : vector<5x64xf32> to vector<1x64xf32>
    %5 = vector.broadcast %4 : vector<1x64xf32> to vector<8x64xf32>
    %6 = arith.mulf %1, %5 : vector<8x64xf32>
    %c2_i32 = arith.constant 2 : i32
    %7 = tpu.dynamic_rotate %1 by %c2_i32 dim 1 : vector<8x64xf32>, i32 -> vector<8x64xf32>
    %8 = vector.extract_strided_slice %3 {offsets = [0, 0], sizes = [1, 64], strides = [1, 1]} : vector<5x64xf32> to vector<1x64xf32>
    %9 = vector.broadcast %8 : vector<1x64xf32> to vector<8x64xf32>
    %10 = arith.mulf %7, %9 : vector<8x64xf32>
    %11 = arith.addf %6, %10 : vector<8x64xf32>
    %c1_i32 = arith.constant 1 : i32
    %12 = tpu.dynamic_rotate %1 by %c1_i32 dim 1 : vector<8x64xf32>, i32 -> vector<8x64xf32>
    %13 = vector.extract_strided_slice %3 {offsets = [1, 0], sizes = [1, 64], strides = [1, 1]} : vector<5x64xf32> to vector<1x64xf32>
    %14 = vector.broadcast %13 : vector<1x64xf32> to vector<8x64xf32>
    %15 = arith.mulf %12, %14 : vector<8x64xf32>
    %16 = arith.addf %11, %15 : vector<8x64xf32>
    %c63_i32 = arith.constant 63 : i32
    %17 = tpu.dynamic_rotate %1 by %c63_i32 dim 1 : vector<8x64xf32>, i32 -> vector<8x64xf32>
    %18 = vector.extract_strided_slice %3 {offsets = [3, 0], sizes = [1, 64], strides = [1, 1]} : vector<5x64xf32> to vector<1x64xf32>
    %19 = vector.broadcast %18 : vector<1x64xf32> to vector<8x64xf32>
    %20 = arith.mulf %17, %19 : vector<8x64xf32>
    %21 = arith.addf %16, %20 : vector<8x64xf32>
    %c62_i32 = arith.constant 62 : i32
    %22 = tpu.dynamic_rotate %1 by %c62_i32 dim 1 : vector<8x64xf32>, i32 -> vector<8x64xf32>
    %23 = vector.extract_strided_slice %3 {offsets = [4, 0], sizes = [1, 64], strides = [1, 1]} : vector<5x64xf32> to vector<1x64xf32>
    %24 = vector.broadcast %23 : vector<1x64xf32> to vector<8x64xf32>
    %25 = arith.mulf %22, %24 : vector<8x64xf32>
    %26 = arith.addf %21, %25 : vector<8x64xf32>
    %c0_7 = arith.constant 0 : index
    %c0_8 = arith.constant 0 : index
    %c0_9 = arith.constant 0 : index
    %c0_10 = arith.constant 0 : index
    %27 = vector.load %arg6[%c0_7, %c0_8, %c0_9, %c0_10] : memref<1x1x8x64xf32, #tpu.memory_space<vmem>>, vector<1x1x8x64xf32>
    %28 = vector.shape_cast %27 : vector<1x1x8x64xf32> to vector<8x64xf32>
    %29 = vector.shape_cast %26 : vector<8x64xf32> to vector<1x1x8x64xf32>
    tpu.vector_store %arg6[%c0_7, %c0_8, %c0_9, %c0_10], %29 {strides = array<i32>} : memref<1x1x8x64xf32, #tpu.memory_space<vmem>>, vector<1x1x8x64xf32>,
    return
  }
  func.func @transform_0(%arg0: i32, %arg1: i32, %arg2: i32, %arg3: i32) -> (i32, i32, i32, i32) {
    %c0_i32 = arith.constant 0 : i32
    return %arg0, %arg1, %arg2, %arg3 : i32, i32, i32, i32
  }
  func.func @transform_1(%arg0: i32, %arg1: i32, %arg2: i32, %arg3: i32) -> (i32, i32, i32, i32) {
    %c0_i32 = arith.constant 0 : i32
    %c0_i32_0 = arith.constant 0 : i32
    %c0_i32_1 = arith.constant 0 : i32
    return %arg0, %arg1, %c0_i32, %c0_i32_0 : i32, i32, i32, i32
  }
  func.func @transform_2(%arg0: i32, %arg1: i32, %arg2: i32, %arg3: i32) -> (i32, i32, i32, i32) {
    %c0_i32 = arith.constant 0 : i32
    return %arg0, %arg1, %arg2, %arg3 : i32, i32, i32, i32
  }
}

</mosaic_0001>

<bundles_post_ra>
// kernel: tpu_custom_call.1
= control target key start
LH: loop header
LB: loop body
LE: loop exit
PB: predicated region body
PF: predicated region fallthrough
CT: control target
= control target key end

     0   :  { %7 = vsyncpa [#allocation3], 0  ;;  %s794_s0 = inlined_call_operand.vmem [shape: f32[2,2,8,64], index: 0, kind: input, shape index: {}]   ;;  %s795_s1 = inlined_call_operand.vmem [shape: f32[2,2,5,64], index: 1, kind: input, shape index: {}]   ;;  %s796_s2 = inlined_call_operand.hbm [shape: f32[2,2,8,64], index: 2, kind: output, shape index: {}]  }
   0x1   :  { %9 = vsyncpa [#allocation3 + $0x1], 0  ;;  %s654_s9 = smov 0   ;;  %s656_s10 = smov 0  }
   0x2   :  { %s658_s11 = smov 0   ;;  %s660_s12 = smov 0  }
   0x3   :  { %s662_s13 = smov 0   ;;  %s664_s14 = smov 0  }
   0x4   :  { %s666_s15 = smov 0   ;;  %s668_s16 = smov 0  }
   0x5 LB: > { %s438_s17 = sadd.s32 4294967295, %s627_s16   ;;  %s439_s18 = sadd.s32 4294967294, %s627_s16   ;;  %s627_s16 = sphi %s668_s16, %s15_s16   ;;  %s623_s15 = sphi %s666_s15, %s805_s15   ;;  %s619_s14 = sphi %s664_s14, %s804_s14   ;;  %s615_s13 = sphi %s662_s13, %s803_s13   ;;  %s611_s12 = sphi %s660_s12, %s802_s12   ;;  %s607_s11 = sphi %s658_s11, %s801_s11   ;;  %s603_s10 = sphi %s656_s10, %s800_s10   ;;  %s599_s9 = sphi %s654_s9, %s799_s9  }
   0x6   : > { %s37_s19 = sadd.s32 1, %s619_s14  ;;  %s41_s20 = sadd.s32 1, %s623_s15 }
   0x7   : > { %p39_p0 = scmp.ge.s32.totalorder %s37_s19, 2  ;;  %p124_p1 = scmp.ne.s32.totalorder %s607_s11, %s603_s10 }
   0x8   : > { %p125_p2 = scmp.eq.s32.totalorder %s438_s17, 3  ;;  %p130_p5 = scmp.ne.s32.totalorder %s603_s10, %s599_s9 }
   0x9   : > { %s807_s19 = smov (%p39_p0, %s37_s19), 0  ;;  %s809_s20 = smov (!%p39_p0, %s41_s20), %s623_s15 }
   0xa   : > { %s106_s21 = ssub.s32 %s619_s14, %s807_s19  ;;  %p705_p3 = por %p125_p2, %p124_p1 }
   0xb   : > { %p43_p4 = scmp.ge.s32.totalorder %s809_s20, 2  ;;  %p131_p6 = scmp.eq.s32.totalorder %s439_s18, 3 }
   0xc   : > { %p442_p7 = scmp.ge.s32.totalorder %s627_s16, 1  ;;  %p177_p9 = scmp.lt.s32.totalorder %s627_s16, 5 }
   0xd   : > { %s811_s20 = smov (%p43_p4, %s809_s20), 0  ;;  %p714_p8 = por %p131_p6, %p130_p5 }
   0xe   : > { %s105_s24 = ssub.s32 %s623_s15, %s811_s20  ;;  %s114_s25 = sadd.s32 1, %s607_s11 }
   0xf   : > { %s107_s26 = sor.u32 %s106_s21, %s105_s24  ;;  %p178_p10 = pnand %p442_p7, %p177_p9 }
  0x10   : > { %p112_p11 = scmp.eq.s32.totalorder %s107_s26, 0  ;;  %p216_p12 = scmp.lt.s32.totalorder (!%p178_p10), %s615_s13, 1  ;;  %v240_v0 = vlaneseq (!%p178_p10)  ;;  %vm245_vm0 = vcmask (!%p178_p10), 1048064   ;;  %vm308_vm1 = vcmask (!%p178_p10), 523264  }
  0x11   : > { %181 = sbr.rel (%p178_p10) target bundleno = 402 (0x192), region = 28  ;;  %p218_p13 = scmp.lt.s32.totalorder (!%p178_p10), %s611_s12, 1 }
  0x12   : > { %s723_s27 = scalar_select %p112_p11, %s607_s11, %s114_s25  }
  0x13   : > { %v241_v1 = vshrl.u32 (!%p178_p10), %v240_v0, 7  ;;  %s629_s21 = smov (!%p178_p10), 64   ;;  %s630_s24 = smov (!%p178_p10), 62  }
  0x14   : > { %s631_s25 = smov (!%p178_p10), 63   ;;  %s632_s26 = smov (!%p178_p10), 2  }
  0x15   : > { %v254_v2 = vsub.s32 (!%p178_p10), 0, %v241_v1  ;;  %v268_v3 = vsub.s32 (!%p178_p10), 1, %v241_v1  ;;  %v296_v8 = vsub.s32 (!%p178_p10), 4, %v241_v1  ;;  %v282_v10 = vsub.s32 (!%p178_p10), 3, %v241_v1  ;;  %s213_s5 = sand.u32 (!%p178_p10), 1, %s603_s10  }
  0x16   : > { %v242_v24 = vsub.s32 (!%p178_p10), 2, %v241_v1  ;;  %s443_s6 = sshll.u32 (!%p178_p10), %s213_s5, 3 }
  0x18   : > { %s217_s28 = scalar_select %p216_p12, %s615_s13, 1 }
  0x19   : > { %s219_s29 = scalar_select %p218_p13, %s611_s12, 1 }
  0x1a   : > { %s444_s30 = sshll.u32 %s217_s28, 1  ;;  %s633_s28 = smov 1  }
  0x1b   : > { %s227_s3 = sadd.s32 %s444_s30, %s219_s29  ;;  %s634_s29 = smov 65  }
  0x1c   : > { %s445_s4 = sshll.u32 %s227_s3, 3  ;;  %s635_s30 = smov 66  }
  0x1d   : > { %s229_s7 = scalar_lea.vmem %s794_s0, %s445_s4  ;;  %s237_s18 = scalar_lea.vmem %s795_s1, %s445_s4 }
  0x1e   : > { %v238_v4 = vld [vmem:[%s229_s7] sm:$0xff]  ;;  %s636_s3 = smov 126   ;;  %s637_s4 = smov 127  }
  0x1f   : > { %v239_v5 = vld [vmem:[%s237_s18] sm:$0x1f]  ;;  %246 = vrot.lane.b32.xlu0 %v238_v4, %s629_s21  ;;  %s449_s7 = sshll.u32 %s615_s13, 1  ;;  %s215_s18 = scalar_lea.vmem [#allocation2], %s443_s6 }
  0x20   : > { %v255_v6 = vrot.slane %v239_v5, %v254_v2  ;;  %v269_v7 = vrot.slane %v239_v5, %v268_v3  ;;  %v297_v9 = vrot.slane %v239_v5, %v296_v8  ;;  %v283_v13 = vrot.slane %v239_v5, %v282_v10  ;;  %s324_s8 = sadd.s32 %s611_s12, %s449_s7  ;;  %s311_s12 = scalar_lea.sflag [#allocation3], %s213_s5 }
  0x21   : > { %v243_v25 = vrot.slane %v239_v5, %v242_v24  ;;  %s450_s17 = sshll.u32 %s324_s8, 7 }
  0x22   : > { %257 = vrot.lane.b32.xlu1 %v255_v6, %s630_s24 }
  0x23   : > { %v244_v26 = vmul.f32 %v243_v25, %v238_v4 }
  0x26   : > { %271 = vrot.lane.b32.xlu1 %v269_v7, %s631_s25 }
  0x2a   : > { %299 = vrot.lane.b32.xlu1 %v297_v9, %s632_s26  ;;  %s741_s26 = scalar_lea.hbm %s796_s2, %s450_s17 }
  0x91   : > { %v247_v11 = vpop.permute.xlu0 %246 }
  0x92   : > { %v248_v12 = vsel %vm245_vm0, %v247_v11, %v238_v4 }
  0x93   : > { %249 = vrot.lane.b32.xlu0 %v248_v12, %s629_s21  ;;  %s328_s21 = sshll.u32 %s215_s18, 4  ;;  %s743_s21 = int_to_ptr.vmem [resolvable:$true] %s328_s21 }
  0x94   : > { %v258_v14 = vpop.permute.xlu1 %257  ;;  %s533_s13 = scalar_lea.vmem %s743_s21, 128 }
  0x95   : > { %p534_p0 = scmp.ne.s32.totalorder %s743_s21, %s533_s13 }
  0x97   : > { %285 = vrot.lane.b32.xlu0 %v283_v13, %s633_s28  ;;  %p535_p1 = pnand %p534_p0, %p705_p3  ;;  %s638_s28 = smov [#allocation2]  }
  0x98   : > { %v272_v15 = vpop.permute.xlu1 %271 }
  0x99   : > { %p536_p2 = pneg %p535_p1 }
  0x9c   : > { %v300_v20 = vpop.permute.xlu1 %299 }
 0x105   : > { %v250_v16 = vpop.permute.xlu0 %249 }
 0x106   : > { %v251_v17 = vsel %vm245_vm0, %v250_v16, %v238_v4 }
 0x107   : > { %v274_v18 = vmul.f32 %v272_v15, %v251_v17  ;;  %v260_v19 = vmul.f32 %v258_v14, %v251_v17  ;;  %v302_v23 = vmul.f32 %v300_v20, %v251_v17 }
 0x109   : > { %276 = vrot.lane.b32.xlu1 %v274_v18, %s634_s29  ;;  %262 = vrot.lane.b32.xlu0 %v260_v19, %s635_s30  ;;  %v286_v21 = vpop.permute.xlu0 %285  ;;  %s537_s29 = sshll.u32 %s638_s28, 4  ;;  %s538_s29 = int_to_ptr.vmem [resolvable:$false] %s537_s29 }
 0x10a   : > { %v288_v22 = vmul.f32 %v286_v21, %v251_v17  ;;  %s539_s30 = scalar_lea.vmem %s538_s29, 256  ;;  %p540_p4 = scmp.lt.s32.totalorder %s743_s21, %s538_s29 }
 0x10b   : > { %p541_p5 = scmp.lt.s32.totalorder %s539_s30, %s533_s13 }
 0x10d   : > { %304 = vrot.lane.b32.xlu1 %v302_v23, %s636_s3  ;;  %290 = vrot.lane.b32.xlu0 %v288_v22, %s637_s4  ;;  %p542_p6 = por %p541_p5, %p540_p4 }
 0x10f   : > { %p543_p7 = pnand %p542_p6, %p536_p2 }
 0x17b   : > { %v277_v27 = vpop.permute.xlu1 %276  ;;  %v263_v28 = vpop.permute.xlu0 %262 }
 0x17c   : > { %v265_v29 = vadd.f32 %v263_v28, %v244_v26 }
 0x17e   : > { %v279_v30 = vadd.f32 %v277_v27, %v265_v29 }
 0x17f   : > { %v291_v31 = vpop.permute.xlu0 %290  ;;  %v305_v33 = vpop.permute.xlu1 %304 }
 0x180   : > { %v293_v32 = vadd.f32 %v291_v31, %v279_v30 }
 0x182   : > { %v307_v34 = vadd.f32 %v305_v33, %v293_v32 }
 0x184   : > { %309 = vst.msk [vmem:[%s215_s18] sm:$0xff] %vm308_vm1, %v307_v34 }
 0x185   : > { %546 = shalt.err (!%p543_p7)
}
 0x186   : > { %s547_s3 = scalar_lea.hbm %s741_s26, 128  ;;  %s551_s6 = scalar_lea.hbm %s796_s2, 512 }
 0x187   : > { %p548_p9 = scmp.ne.s32.totalorder %s741_s26, %s547_s3  ;;  %p552_p12 = scmp.lt.u32.totalorder %s741_s26, %s796_s2 }
 0x188   : > { %p553_p13 = scmp.lt.u32.totalorder %s551_s6, %s547_s3  ;;  %p555_p1 = scmp.lt.u32.totalorder %s547_s3, %s741_s26 }
 0x189   : > { %p549_p10 = pnand %p548_p9, %p705_p3 }
 0x18a   : > { %p554_p0 = por %p553_p13, %p552_p12 }
 0x18b   : > { %p550_p11 = pneg %p549_p10 }
 0x18c   : > { %p556_p2 = por %p555_p1, %p554_p0 }
 0x18e   : > { %p557_p4 = pnand %p556_p2, %p550_p11 }
 0x190   : > { %560 = shalt.err (!%p557_p4)
}
 0x191   : > { %453 = dma.vmem_to_hbm [thread:$0]  (%p705_p3), %s743_s21, 128, %s741_s26, %s311_s12  }
 0x192 PF: > { %p459_p5 = scmp.ge.s32.totalorder %s627_s16, 2  ;;  %s340_s17 = sand.u32 1, %s599_s9  }
 0x193   : > { %s341_s18 = scalar_lea.sflag [#allocation3], %s340_s17 }
 0x194   : > { %p456_p6 = pnand %p459_p5, %p714_p8 }
 0x196   : > { %594 = dma.done.wait (!%p456_p6), %s341_s18, 128  }
 0x197   : > { %596 = vsyncadd (!%p456_p6), %s341_s18, 4294967168  ;;  %s15_s16 = sadd.s32 1, %s627_s16   ;;  %s799_s9 = smov %s603_s10 }
 0x198   : > { %p12_p7 = scmp.ge.s32.totalorder %s15_s16, 6   ;;  %s800_s10 = smov %s607_s11 }
 0x199   : > { %s801_s11 = smov %s723_s27  ;;  %s802_s12 = smov %s619_s14 }
 0x19a   : > { %s803_s13 = smov %s623_s15  ;;  %s804_s14 = smov %s807_s19 }
 0x19b   : > { %s805_s15 = smov %s811_s20  ;;  %14 = sbr.rel (!%p12_p7) target bundleno = 5 (0x5), region = 66 }
 0x1a2   :  { %346 = vsyncpa [#allocation3], 1 }
 0x1a3   :  { %348 = vsyncpa [#allocation3 + $0x1], 1 }

</bundles_post_ra>
